<compile_context>
chip_gen: v7x
topology: tpu7x:2x2x1
jax: 0.10.0
libtpu: 0.0.40
codegen_flags: <defaults>
</compile_context>

<pallas_src>
import functools
import math

import jax
import jax.numpy as jnp
from jax.experimental import pallas as pl
from jax.experimental.pallas import tpu as pltpu


def get_sinusoidal_table(num_embeddings, embedding_dim, padding_idx=None):
    """Matches SinusoidalPositionalEmbedding.get_embedding (tensor2tensor style).

    Only used by the pure-JAX reference check in __main__."""
    half_dim = embedding_dim // 2
    scale = math.log(10000.0) / (half_dim - 1)
    freqs = jnp.exp(jnp.arange(half_dim, dtype=jnp.float32) * -scale)
    angles = jnp.arange(num_embeddings, dtype=jnp.float32)[:, None] * freqs[None, :]
    emb = jnp.concatenate([jnp.sin(angles), jnp.cos(angles)], axis=1)
    if embedding_dim % 2 == 1:
        emb = jnp.concatenate([emb, jnp.zeros((num_embeddings, 1), jnp.float32)], axis=1)
    if padding_idx is not None:
        emb = emb.at[padding_idx, :].set(0.0)
    return emb.astype(jnp.float32)


def _pos_emb_kernel(pos_ref, freq_ref, cosw_ref, out_ref, *, padding_idx):
    # pos_ref : (TR, 1) int32   positions for this tile of flattened rows
    # freq_ref: (1, D)  float32 per-column frequency (sin half | cos half | 0 pad col)
    # cosw_ref: (1, D)  float32 1.0 on cos columns, 0.0 on sin columns / odd pad col
    # out_ref : (TR, D) float32 lane-dense output slab
    pos = pos_ref[...]                                      # (TR, 1) int32
    valid = (pos != padding_idx).astype(jnp.float32)        # (TR, 1): 0 on padding rows
    ang = pos.astype(jnp.float32) * freq_ref[...]           # (TR, D) broadcast multiply
    cos_w = cosw_ref[...]                                   # (1, D)
    sin_w = 1.0 - cos_w
    # Weights are exactly 0/1, so this selects sin/cos per column exactly.
    emb = sin_w * jnp.sin(ang) + cos_w * jnp.cos(ang)       # (TR, D), EUP transcendentals
    out_ref[...] = emb * valid                              # padding rows -> all zeros


def sinusoidal_positional_embedding(tokens, embedding_dim, padding_idx, *, row_tile=512):
    """tokens: [B, S] int ; returns [B, S, embedding_dim] float32 (PyTorch forward)."""
    B, S = tokens.shape
    D = int(embedding_dim)
    half_dim = D // 2

    # Per-column frequency / cos-selector vectors (lane axis = embedding dim).
    scale = math.log(10000.0) / (half_dim - 1)
    freqs = jnp.exp(jnp.arange(half_dim, dtype=jnp.float32) * -scale)
    pad_cols = D - 2 * half_dim  # 1 extra zero column if embedding_dim is odd
    freq_full = jnp.concatenate(
        [freqs, freqs, jnp.zeros((pad_cols,), jnp.float32)]).reshape(1, D)
    cos_w = jnp.concatenate(
        [jnp.zeros((half_dim,), jnp.float32),
         jnp.ones((half_dim,), jnp.float32),
         jnp.zeros((pad_cols,), jnp.float32)]).reshape(1, D)

    # make_positions: trivial O(B*S) int work, kept in XLA (per perf review).
    tok = tokens.astype(jnp.int32)
    mask = (tok != padding_idx).astype(jnp.int32)
    positions = jnp.cumsum(mask, axis=1) * mask + padding_idx   # [B, S] int32

    # Flatten rows and tile them in large blocks (>= 0.35us/step overhead amortized).
    rows = B * S
    if rows <= row_tile:
        tr = ((rows + 7) // 8) * 8          # single block, rounded to sublane multiple
    else:
        tr = row_tile                       # multiple of 8
    rows_padded = pl.cdiv(rows, tr) * tr
    pos_flat = positions.reshape(rows, 1)
    if rows_padded != rows:
        pos_flat = jnp.pad(pos_flat, ((0, rows_padded - rows), (0, 0)),
                           constant_values=padding_idx)

    kernel = functools.partial(_pos_emb_kernel, padding_idx=padding_idx)
    out = pl.pallas_call(
        kernel,
        out_shape=jax.ShapeDtypeStruct((rows_padded, D), jnp.float32),
        grid_spec=pltpu.PrefetchScalarGridSpec(
            num_scalar_prefetch=0,
            grid=(rows_padded // tr,),
            in_specs=[
                pl.BlockSpec((tr, 1), lambda i: (i, 0)),
                pl.BlockSpec((1, D), lambda i: (0, 0)),
                pl.BlockSpec((1, D), lambda i: (0, 0)),
            ],
            out_specs=pl.BlockSpec((tr, D), lambda i: (i, 0)),
        ),
        compiler_params=pltpu.CompilerParams(
            dimension_semantics=("parallel",),  # shards row tiles across v7x's 2 TCs
        ),
    )(pos_flat, freq_full, cos_w)

    return out[:rows].reshape(B, S, D)


if __name__ == "__main__":
    B, S, D = 2, 16, 32
    padding_idx = 1

    key = jax.random.PRNGKey(0)
    tokens = jax.random.randint(key, (B, S), minval=2, maxval=20, dtype=jnp.int32)
    # Introduce some padding symbols.
    tokens = tokens.at[0, 12:].set(padding_idx)
    tokens = tokens.at[1, 9:].set(padding_idx)

    out = sinusoidal_positional_embedding(tokens, D, padding_idx)
    out = jax.block_until_ready(out)

    # Pure-JAX reference (exact PyTorch forward semantics: table build + index_select).
    table = get_sinusoidal_table(padding_idx + 1 + S, D, padding_idx)
    mask = (tokens != padding_idx).astype(jnp.int32)
    positions = jnp.cumsum(mask, axis=1) * mask + padding_idx
    expected = table[positions]                                  # (B, S, D)

    assert out.shape == (B, S, D), out.shape
    assert out.dtype == jnp.float32, out.dtype
    assert jnp.allclose(out, expected, atol=1e-5, rtol=1e-5), "mismatch vs reference"

    print("KERNEL_OK")
</pallas_src>

<mosaic_0001>
module attributes {stable_mosaic.version = 11 : i64} {
  func.func @_pos_emb_kernel(%arg0: i32, %arg1: memref<32x1xi32, #tpu.memory_space<vmem>>, %arg2: memref<1x32xf32, #tpu.memory_space<vmem>>, %arg3: memref<1x32xf32, #tpu.memory_space<vmem>>, %arg4: memref<32x32xf32, #tpu.memory_space<vmem>>) attributes {dimension_semantics = [#tpu.dimension_semantics<parallel>], iteration_bounds = array<i64: 1>, scalar_prefetch = 0 : i64, scratch_operands = 0 : i64, tpu.core_type = #tpu.core_type<tc>, window_params = [{transform_indices = @transform_0, window_bounds = array<i64: 32, 1>}, {pipeline_mode = #tpu.pipeline_mode<synchronous>, transform_indices = @transform_1, window_bounds = array<i64: 1, 32>}, {pipeline_mode = #tpu.pipeline_mode<synchronous>, transform_indices = @transform_2, window_bounds = array<i64: 1, 32>}, {transform_indices = @transform_3, window_bounds = array<i64: 32, 32>}]} {
    %c0 = arith.constant 0 : index
    %c0_0 = arith.constant 0 : index
    %0 = vector.load %arg1[%c0, %c0_0] : memref<32x1xi32, #tpu.memory_space<vmem>>, vector<32x1xi32>
    %c1_i32 = arith.constant 1 : i32
    %1 = vector.broadcast %c1_i32 : i32 to vector<32x1xi32>
    %2 = arith.cmpi ne, %0, %1 : vector<32x1xi32>
    %3 = arith.extui %2 : vector<32x1xi1> to vector<32x1xi32>
    %4 = arith.sitofp %3 : vector<32x1xi32> to vector<32x1xf32>
    %5 = arith.sitofp %0 : vector<32x1xi32> to vector<32x1xf32>
    %c0_1 = arith.constant 0 : index
    %c0_2 = arith.constant 0 : index
    %6 = vector.load %arg2[%c0_1, %c0_2] : memref<1x32xf32, #tpu.memory_space<vmem>>, vector<1x32xf32>
    %7 = vector.broadcast %5 : vector<32x1xf32> to vector<32x32xf32>
    %8 = vector.broadcast %6 : vector<1x32xf32> to vector<32x32xf32>
    %9 = arith.mulf %7, %8 : vector<32x32xf32>
    %c0_3 = arith.constant 0 : index
    %c0_4 = arith.constant 0 : index
    %10 = vector.load %arg3[%c0_3, %c0_4] : memref<1x32xf32, #tpu.memory_space<vmem>>, vector<1x32xf32>
    %cst = arith.constant 1.000000e+00 : f32
    %11 = vector.broadcast %cst : f32 to vector<1x32xf32>
    %12 = arith.subf %11, %10 : vector<1x32xf32>
    %13 = math.sin %9 : vector<32x32xf32>
    %14 = vector.broadcast %12 : vector<1x32xf32> to vector<32x32xf32>
    %15 = arith.mulf %14, %13 : vector<32x32xf32>
    %16 = math.cos %9 : vector<32x32xf32>
    %17 = vector.broadcast %10 : vector<1x32xf32> to vector<32x32xf32>
    %18 = arith.mulf %17, %16 : vector<32x32xf32>
    %19 = arith.addf %15, %18 : vector<32x32xf32>
    %20 = vector.broadcast %4 : vector<32x1xf32> to vector<32x32xf32>
    %21 = arith.mulf %19, %20 : vector<32x32xf32>
    %c0_5 = arith.constant 0 : index
    %c0_6 = arith.constant 0 : index
    %22 = vector.load %arg4[%c0_5, %c0_6] : memref<32x32xf32, #tpu.memory_space<vmem>>, vector<32x32xf32>
    tpu.vector_store %arg4[%c0_5, %c0_6], %21 {strides = array<i32>} : memref<32x32xf32, #tpu.memory_space<vmem>>, vector<32x32xf32>,
    return
  }
  func.func @transform_0(%arg0: i32) -> (i32, i32) {
    %c0_i32 = arith.constant 0 : i32
    %c0_i32_0 = arith.constant 0 : i32
    return %arg0, %c0_i32 : i32, i32
  }
  func.func @transform_1(%arg0: i32) -> (i32, i32) {
    %c0_i32 = arith.constant 0 : i32
    %c0_i32_0 = arith.constant 0 : i32
    %c0_i32_1 = arith.constant 0 : i32
    return %c0_i32, %c0_i32_0 : i32, i32
  }
  func.func @transform_2(%arg0: i32) -> (i32, i32) {
    %c0_i32 = arith.constant 0 : i32
    %c0_i32_0 = arith.constant 0 : i32
    %c0_i32_1 = arith.constant 0 : i32
    return %c0_i32, %c0_i32_0 : i32, i32
  }
  func.func @transform_3(%arg0: i32) -> (i32, i32) {
    %c0_i32 = arith.constant 0 : i32
    %c0_i32_0 = arith.constant 0 : i32
    return %arg0, %c0_i32 : i32, i32
  }
}

</mosaic_0001>

<bundles_post_ra>
// kernel: tpu_custom_call.1
= control target key start
LH: loop header
LB: loop body
LE: loop exit
PB: predicated region body
PF: predicated region fallthrough
CT: control target
= control target key end

     0   :  { %v1081_v3 = vmov 0   ;;  %s1472_s0 = inlined_call_operand.vmem [shape: s32[32,1], index: 0, kind: input, shape index: {}]   ;;  %s1473_s1 = inlined_call_operand.vmem [shape: f32[1,32], index: 1, kind: input, shape index: {}]   ;;  %s1474_s2 = inlined_call_operand.vmem [shape: f32[1,32], index: 2, kind: input, shape index: {}]   ;;  %s1475_s3 = inlined_call_operand.hbm [shape: f32[32,32], index: 3, kind: output, shape index: {}]  }
   0x1   :  { %v17_v0 = vld [vmem:[%s1472_s0 + $0x10] sm:$0xff]  ;;  %v15_v1 = vld [vmem:[%s1472_s0] sm:$0xff]  ;;  %v18_v2 = vld [vmem:[%s1472_s0 + $0x18] sm:$0xff]  ;;  %1030 = vset.pattern.permute.xlu1 %v1081_v3  ;;  %1029 = vset.pattern.permute.xlu0 %v1081_v3 }
   0x2   :  { %v33_v4 = vcvt.s32.f32 %v17_v0  ;;  %vm21_vm0 = vcmp.ne.s32.totalorder %v17_v0, 1  ;;  %v31_v5 = vcvt.s32.f32 %v15_v1  ;;  %vm19_vm1 = vcmp.ne.s32.totalorder %v15_v1, 1  ;;  %v16_v6 = vld [vmem:[%s1472_s0 + $0x8] sm:$0xff] }
   0x3   :  { %8 = vsyncpa [#allocation3], 0  ;;  %v34_v7 = vcvt.s32.f32 %v18_v2  ;;  %v32_v8 = vcvt.s32.f32 %v16_v6  ;;  %vm22_vm2 = vcmp.ne.s32.totalorder %v18_v2, 1  ;;  %vm20_vm3 = vcmp.ne.s32.totalorder %v16_v6, 1  ;;  %v969_v16 = vld [vmem:[%s1473_s1] ss:$0 sm:$0xff] }
   0x4   :  { %48 = vperm.xlu1 %1030, %v33_v4   ;;  %38 = vperm.xlu0 %1029, %v31_v5   ;;  %v1082_v9 = vmov 0.0   ;;  %v485_v36 = vlaneseq  ;;  %v1083_v56 = vmov 683565275   ;;  %v1084_v60 = vmov 2475754826  }
   0x5   :  { %v967_v10 = vsel %vm21_vm0, 1.0, %v1082_v9  ;;  %v965_v11 = vsel %vm19_vm1, 1.0, %v1082_v9  ;;  %v968_v12 = vsel %vm22_vm2, 1.0, %v1082_v9  ;;  %v966_v13 = vsel %vm20_vm3, 1.0, %v1082_v9 }
   0x6   :  { %v1036_v14 = vpack.i.bf16 %v968_v12, %v967_v10  ;;  %v1031_v15 = vpack.i.bf16 %v966_v13, %v965_v11  ;;  %v1149_v46 = vshrl.u32 %v485_v36, 7  ;;  %v1085_v62 = vmov 2131351028  }
   0x7   :  { %v1086_v0 = vmov 2102212464   ;;  %v1087_v2 = vmov 920167782   ;;  %v1088_v9 = vmov 1326507024  }
   0x8   :  { %53 = vperm.xlu1 %1030, %v34_v7   ;;  %43 = vperm.xlu0 %1029, %v32_v8  }
   0xc   :  { %1037 = vperm.xlu1 %1030, %v1036_v14   ;;  %1032 = vperm.xlu0 %1029, %v1031_v15  }
  0x83   :  { %v49_v17 = vpop.permute.xlu1 %48  ;;  %v39_v18 = vpop.permute.xlu0 %38 }
  0x84   :  { %v1127_v19 = vmul.f32 %v969_v16, %v49_v17  ;;  %v1129_v20 = vmul.f32 %v969_v16, %v39_v18 }
  0x86   :  { %v276_v21 = vand.u32 2147483647, %v1127_v19  ;;  %v279_v22 = vand.u32 2139095040, %v1127_v19  ;;  %v68_v23 = vand.u32 2147483647, %v1129_v20  ;;  %v71_v24 = vand.u32 2139095040, %v1129_v20 }
  0x87   :  { %v54_v25 = vpop.permute.xlu1 %53  ;;  %v44_v31 = vpop.permute.xlu0 %43  ;;  %vm278_vm0 = vcmp.lt.s32.totalorder %v1127_v19, 0 }
  0x88   :  { %v280_v26 = vshrl.u32 %v279_v22, 23  ;;  %v283_v27 = vand.u32 8388607, %v276_v21  ;;  %v1137_v28 = vmul.f32 %v969_v16, %v54_v25  ;;  %v72_v29 = vshrl.u32 %v71_v24, 23 }
  0x89   :  { %v75_v30 = vand.u32 8388607, %v68_v23  ;;  %v1143_v39 = vmul.f32 %v969_v16, %v44_v31  ;;  %vm1261_vm2 = vcmp.le.f32.partialorder %v276_v21, 0.7853982 }
  0x8a   :  { %v978_v32 = vadd.s32 4294967169, %v280_v26  ;;  %v380_v33 = vand.u32 2147483647, %v1137_v28  ;;  %v970_v34 = vadd.s32 4294967169, %v72_v29  ;;  %v383_v35 = vand.u32 2139095040, %v1137_v28 }
  0x8b   :  { %v284_v37 = vor.u32 8388608, %v283_v27  ;;  %v76_v40 = vor.u32 8388608, %v75_v30  ;;  %v172_v50 = vand.u32 2147483647, %v1143_v39 }
  0x8c   :  { %v286_v38 = vadd.s32 1, %v978_v32  ;;  %v78_v41 = vadd.s32 1, %v970_v34  ;;  %v384_v42 = vshrl.u32 %v383_v35, 23  ;;  %v1147_v43 = vand.u32 8388607, %v380_v33 }
  0x8d   :  { %v1152_v51 = vshll.u32 %v284_v37, 8  ;;  %v1156_v53 = vshll.u32 %v76_v40, 8 }
  0x8e   :  { %vm287_vm4 = vcmp.gt.s32.totalorder %v286_v38, 0  ;;  %vm79_vm5 = vcmp.gt.s32.totalorder %v78_v41, 0  ;;  %v982_v45 = vadd.s32 4294967169, %v384_v42  ;;  %v388_v54 = vor.u32 8388608, %v1147_v43 }
  0x8f   :  { %v288_v44 = vsel %vm287_vm4, %v286_v38, 0  ;;  %v80_v49 = vsel %vm79_vm5, %v78_v41, 0 }
  0x90   :  { %v289_v47 = vshrl.u32 %v288_v44, 5  ;;  %v290_v48 = vand.u32 31, %v288_v44  ;;  %v1154_v52 = vshrl.u32 %v80_v49, 5  ;;  %v82_v58 = vand.u32 31, %v80_v49 }
  0x91   :  { %v1160_v59 = vadd.s32 1, %v982_v45 }
  0x92   :  { %v291_v55 = vsub.s32 32, %v290_v48  ;;  %v293_v57 = vshll.u32 %v1083_v56, %v290_v48  ;;  %v296_v61 = vshll.u32 %v1084_v60, %v290_v48  ;;  %v299_v63 = vshll.u32 %v1085_v62, %v290_v48 }
  0x93   :  { %v302_v1 = vshll.u32 %v1086_v0, %v290_v48  ;;  %v305_v3 = vshll.u32 %v1087_v2, %v290_v48  ;;  %vm308_vm6 = vcmp.lt.s32.totalorder %v289_v47, 1  ;;  %vm309_vm7 = vcmp.lt.s32.totalorder %v289_v47, 2 }
  0x94   :  { %v294_v4 = vshrl.u32 %v1084_v60, %v291_v55  ;;  %v297_v5 = vshrl.u32 %v1085_v62, %v291_v55  ;;  %v300_v6 = vshrl.u32 %v1086_v0, %v291_v55  ;;  %v292_v7 = vshrl.u32 %v1083_v56, %v291_v55 }
  0x95   :  { %v303_v8 = vshrl.u32 %v1087_v2, %v291_v55  ;;  %v306_v10 = vshrl.u32 %v1088_v9, %v291_v55  ;;  %v83_v14 = vsub.s32 32, %v82_v58  ;;  %vm310_vm8 = vcmp.lt.s32.totalorder %v289_v47, 3 }
  0x96   :  { %v295_v11 = vor.u32 %v294_v4, %v293_v57  ;;  %v298_v12 = vor.u32 %v297_v5, %v296_v61  ;;  %v301_v13 = vor.u32 %v300_v6, %v299_v63  ;;  %vm311_vm9 = vcmp.lt.s32.totalorder %v289_v47, 4 }
  0x97   :  { %v304_v15 = vor.u32 %v303_v8, %v302_v1  ;;  %v307_v16 = vor.u32 %v306_v10, %v305_v3  ;;  %v85_v29 = vshll.u32 %v1083_v56, %v82_v58  ;;  %v86_v32 = vshrl.u32 %v1084_v60, %v83_v14 }
  0x98   :  { %v312_v17 = vsel %vm308_vm6, %v292_v7, %v295_v11  ;;  %v313_v18 = vsel %vm311_vm9, %v301_v13, 2102212464  ;;  %v316_v22 = vsel %vm308_vm6, %v295_v11, %v298_v12  ;;  %v320_v24 = vsel %vm308_vm6, %v298_v12, %v301_v13 }
  0x99   :  { %v314_v25 = vsel %vm310_vm8, %v298_v12, %v313_v18  ;;  %v317_v26 = vsel %vm311_vm9, %v304_v15, 920167782  ;;  %v321_v27 = vsel %vm311_vm9, %v307_v16, 1326507024  ;;  %v88_v34 = vshll.u32 %v1084_v60, %v82_v58 }
  0x9a   :  { %v318_v30 = vsel %vm310_vm8, %v301_v13, %v317_v26  ;;  %v322_v31 = vsel %vm310_vm8, %v304_v15, %v321_v27  ;;  %v315_v35 = vsel %vm309_vm7, %v312_v17, %v314_v25  ;;  %v89_v38 = vshrl.u32 %v1085_v62, %v83_v14  ;;  %v1218_v27 = vld [vmem:[%s1474_s2] sm:$0x1]  ;;  %s1089_s2 = smov [#allocation2]  }
  0x9b   :  { %v319_v36 = vsel %vm309_vm7, %v316_v22, %v318_v30  ;;  %v323_v37 = vsel %vm309_vm7, %v320_v24, %v322_v31  ;;  %v87_v45 = vor.u32 %v86_v32, %v85_v29  ;;  %v91_v49 = vshll.u32 %v1085_v62, %v82_v58  ;;  %s954_s22 = sshll.u32 %s1089_s2, 4  ;;  %s955_s22 = int_to_ptr.vmem [resolvable:$true] %s954_s22 }
  0x9c   :  { %v1183_v40 = vmul.u32.u64.low %v1152_v51, %v323_v37  ;;  %v1184_v41 = vmul.u32.u64.high %v1152_v51, %v323_v37, %v1183_v40  ;;  %v1187_v42 = vmul.u32.u64.low %v1152_v51, %v319_v36  ;;  %v1188_v44 = vmul.u32.u64.high %v1152_v51, %v319_v36, %v1187_v42  ;;  %s1057_s23 = scalar_lea.vmem %s955_s22, 512  ;;  %p1062_p1 = scmp.lt.s32.totalorder %s955_s22, %s955_s22 }
  0x9d   :  { %v90_v48 = vor.u32 %v89_v38, %v88_v34  ;;  %v92_v55 = vshrl.u32 %v1086_v0, %v83_v14  ;;  %v84_v57 = vshrl.u32 %v1083_v56, %v83_v14  ;;  %v94_v47 = vshll.u32 %v1086_v0, %v82_v58  ;;  %p1058_p0 = scmp.ne.s32.totalorder %s955_s22, %s1057_s23  ;;  %p1063_p2 = scmp.lt.s32.totalorder %s1057_s23, %s1057_s23 }
  0x9e   :  { %v95_v61 = vshrl.u32 %v1087_v2, %v83_v14  ;;  %v98_v63 = vshrl.u32 %v1088_v9, %v83_v14  ;;  %v331_v1 = vmul.u32 %v1152_v51, %v315_v35  ;;  %v97_v4 = vshll.u32 %v1087_v2, %v82_v58 }
  0x9f   :  { %v93_v3 = vor.u32 %v92_v55, %v91_v49  ;;  %vm100_vm10 = vcmp.lt.s32.totalorder %v1154_v52, 1  ;;  %vm333_vm11 = vc.u32 %v1184_v41, %v1187_v42  ;;  %v334_v5 = vadd.s32 1, %v1188_v44  ;;  %p1064_p3 = por %p1063_p2, %p1062_p1 }
  0xa0   :  { %v96_v6 = vor.u32 %v95_v61, %v94_v47  ;;  %vm101_vm12 = vcmp.lt.s32.totalorder %v1154_v52, 2  ;;  %v99_v7 = vor.u32 %v98_v63, %v97_v4  ;;  %vm102_vm13 = vcmp.lt.s32.totalorder %v1154_v52, 3 }
  0xa1   :  { %vm103_vm14 = vcmp.lt.s32.totalorder %v1154_v52, 4  ;;  %v108_v8 = vsel %vm100_vm10, %v87_v45, %v90_v48  ;;  %v335_v51 = vsel %vm333_vm11, %v334_v5, %v1188_v44  ;;  %v112_v58 = vsel %vm100_vm10, %v90_v48, %v93_v3  ;;  %p1065_p4 = pnand %p1064_p3, %p1058_p0 }
  0xa2   :  { %v105_v10 = vsel %vm103_vm14, %v93_v3, 2102212464  ;;  %v109_v11 = vsel %vm103_vm14, %v96_v6, 920167782  ;;  %v336_v12 = vadd.s32 %v335_v51, %v331_v1  ;;  %v104_v13 = vsel %vm100_vm10, %v84_v57, %v87_v45 }
  0xa3   :  { %v110_v14 = vsel %vm102_vm13, %v93_v3, %v109_v11  ;;  %v113_v15 = vsel %vm103_vm14, %v99_v7, 1326507024  ;;  %v106_v16 = vsel %vm102_vm13, %v90_v48, %v105_v10  ;;  %vm391_vm15 = vcmp.gt.s32.totalorder %v1160_v59, 0 }
  0xa4   :  { %v111_v17 = vsel %vm101_vm12, %v108_v8, %v110_v14  ;;  %v114_v18 = vsel %vm102_vm13, %v96_v6, %v113_v15  ;;  %v337_v22 = vadd.s32 536870912, %v336_v12  ;;  %v392_v31 = vsel %vm391_vm15, %v1160_v59, 0 }
  0xa5   :  { %v115_v24 = vsel %vm101_vm12, %v112_v58, %v114_v18  ;;  %v1211_v25 = vmul.u32.u64.low %v1156_v53, %v111_v17  ;;  %v1212_v26 = vmul.u32.u64.high %v1156_v53, %v111_v17, %v1211_v25  ;;  %v175_v32 = vand.u32 2139095040, %v1143_v39 }
  0xa6   :  { %v1221_v29 = vmul.u32.u64.low %v1156_v53, %v115_v24  ;;  %v1222_v30 = vmul.u32.u64.high %v1156_v53, %v115_v24, %v1221_v29  ;;  %v338_v34 = vshrl.u32 %v337_v22, 30  ;;  %v107_v35 = vsel %vm101_vm12, %v104_v13, %v106_v16 }
  0xa7   :  { %v394_v36 = vand.u32 31, %v392_v31  ;;  %v1231_v37 = vand.u32 8388607, %v172_v50  ;;  %v67_v38 = vsub.f32 1.0, %v1218_v27  ;;  %v487_v40 = vsub.s32 0, %v1149_v46 }
  0xa8   :  { %v339_v44 = vshll.u32 %v338_v34, 30  ;;  %v126_v59 = vadd.s32 1, %v1212_v26  ;;  %v1238_v48 = vshll.u32 %v388_v54, 8  ;;  %v332_v52 = vadd.s32 %v1187_v42, %v1184_v41 }
  0xa9   :  { %v395_v45 = vsub.s32 32, %v394_v36  ;;  %v123_v49 = vmul.u32 %v1156_v53, %v107_v35  ;;  %vm125_vm1 = vc.u32 %v1222_v30, %v1211_v25  ;;  %v176_v55 = vshrl.u32 %v175_v32, 23 }
  0xaa   :  { %v1244_v57 = vsub.s32 %v336_v12, %v339_v44  ;;  %v362_v47 = vsub.s32 4, %v338_v34  ;;  %v127_v61 = vsel %vm125_vm1, %v126_v59, %v1212_v26  ;;  %v393_v63 = vshrl.u32 %v392_v31, 5 }
  0xab   :  { %v128_v1 = vadd.s32 %v127_v61, %v123_v49  ;;  %v397_v3 = vshll.u32 %v1083_v56, %v394_v36  ;;  %v398_v43 = vshrl.u32 %v1084_v60, %v395_v45  ;;  %v401_v54 = vshrl.u32 %v1085_v62, %v395_v45 }
  0xac   :  { %v342_v41 = vsub.s32 0, %v1244_v57  ;;  %v400_v53 = vshll.u32 %v1084_v60, %v394_v36  ;;  %v403_v42 = vshll.u32 %v1085_v62, %v394_v36  ;;  %v404_v4 = vshrl.u32 %v1086_v0, %v395_v45 }
  0xad   :  { %v129_v5 = vadd.s32 536870912, %v128_v1  ;;  %v399_v6 = vor.u32 %v398_v43, %v397_v3  ;;  %v406_v7 = vshll.u32 %v1086_v0, %v394_v36  ;;  %v407_v8 = vshrl.u32 %v1087_v2, %v395_v45 }
  0xae   :  { %v979_v51 = vmin.u32 %v342_v41, %v1244_v57  ;;  %v402_v10 = vor.u32 %v401_v54, %v400_v53  ;;  %v405_v11 = vor.u32 %v404_v4, %v403_v42  ;;  %v410_v58 = vshrl.u32 %v1088_v9, %v395_v45 }
  0xaf   :  { %v130_v12 = vshrl.u32 %v129_v5, 30  ;;  %v408_v13 = vor.u32 %v407_v8, %v406_v7  ;;  %v409_v14 = vshll.u32 %v1087_v2, %v394_v36  ;;  %v974_v15 = vadd.s32 4294967169, %v176_v55 }
  0xb0   :  { %v344_v17 = vclz %v979_v51  ;;  %v363_v18 = vsel %vm278_vm0, %v362_v47, %v338_v34  ;;  %v396_v22 = vshrl.u32 %v1083_v56, %v395_v45  ;;  %vm412_vm3 = vcmp.lt.s32.totalorder %v393_v63, 1 }
  0xb1   :  { %v131_v24 = vshll.u32 %v130_v12, 30  ;;  %v411_v26 = vor.u32 %v410_v58, %v409_v14  ;;  %vm414_vm4 = vcmp.lt.s32.totalorder %v393_v63, 3  ;;  %vm415_vm5 = vcmp.lt.s32.totalorder %v393_v63, 4 }
  0xb2   :  { %v980_v29 = vadd.s32 4294967294, %v344_v17  ;;  %vm70_vm6 = vcmp.lt.s32.totalorder %v1129_v20, 0  ;;  %v417_v31 = vsel %vm415_vm5, %v405_v11, 2102212464  ;;  %v420_v21 = vsel %vm412_vm3, %v399_v6, %v402_v10 }
  0xb3   :  { %v421_v32 = vsel %vm415_vm5, %v408_v13, 920167782  ;;  %v1272_v35 = vsub.s32 %v128_v1, %v131_v24  ;;  %v154_v36 = vsub.s32 4, %v130_v12  ;;  %vm413_vm7 = vcmp.lt.s32.totalorder %v393_v63, 2 }
  0xb4   :  { %v422_v34 = vsel %vm414_vm4, %v405_v11, %v421_v32  ;;  %vm981_vm8 = vcmp.lt.s32.totalorder %v980_v29, 0  ;;  %v416_v44 = vsel %vm412_vm3, %v396_v22, %v399_v6  ;;  %v424_v45 = vsel %vm412_vm3, %v402_v10, %v405_v11 }
  0xb5   :  { %v423_v59 = vsel %vm413_vm7, %v420_v21, %v422_v34  ;;  %v347_v49 = vsel %vm981_vm8, 0, %v980_v29  ;;  %v134_v55 = vsub.s32 0, %v1272_v35  ;;  %v418_v47 = vsel %vm414_vm4, %v402_v10, %v417_v31 }
  0xb6   :  { %v425_v61 = vsel %vm415_vm5, %v411_v26, 1326507024  ;;  %v348_v1 = vsub.s32 32, %v347_v49  ;;  %v349_v3 = vshll.u32 %v1244_v57, %v347_v49  ;;  %v352_v43 = vsub.s32 4294967266, %v347_v49 }
  0xb7   :  { %vm1284_vm9 = vcmp.le.f32.partialorder %v68_v23, 0.7853982  ;;  %v426_v41 = vsel %vm414_vm4, %v408_v13, %v425_v61  ;;  %v971_v53 = vmin.u32 %v134_v55, %v1272_v35  ;;  %v365_v23 = vsel %vm1261_vm2, 0, %v363_v18 }
  0xb8   :  { %v427_v42 = vsel %vm413_vm7, %v424_v45, %v426_v41  ;;  %v1292_v4 = vmul.u32.u64.low %v1238_v48, %v423_v59  ;;  %v1293_v5 = vmul.u32.u64.high %v1238_v48, %v423_v59, %v1292_v4  ;;  %v350_v6 = vshrl.u32 %v332_v52, %v348_v1 }
  0xb9   :  { %v353_v57 = vadd.s32 127, %v352_v43  ;;  %v1297_v7 = vmul.u32.u64.low %v1238_v48, %v427_v42  ;;  %v1298_v8 = vmul.u32.u64.high %v1238_v48, %v427_v42, %v1297_v7  ;;  %v136_v51 = vclz %v971_v53 }
  0xba   :  { %v419_v10 = vsel %vm413_vm7, %v416_v44, %v418_v47  ;;  %v182_v11 = vadd.s32 1, %v974_v15  ;;  %v351_v58 = vor.u32 %v350_v6, %v349_v3  ;;  %v124_v14 = vadd.s32 %v1211_v25, %v1222_v30 }
  0xbb   :  { %v354_v13 = vshll.u32 %v353_v57, 23  ;;  %v180_v17 = vor.u32 8388608, %v1231_v37  ;;  %v972_v52 = vadd.s32 4294967294, %v136_v51  ;;  %v155_v22 = vsel %vm70_vm6, %v154_v36, %v130_v12 }
  0xbc   :  { %v438_v24 = vadd.s32 1, %v1293_v5  ;;  %vm183_vm10 = vcmp.gt.s32.totalorder %v182_v11, 0  ;;  %v435_v18 = vmul.u32 %v1238_v48, %v419_v10  ;;  %vm437_vm11 = vc.u32 %v1298_v8, %v1292_v4 }
  0xbd   :  { %v355_v26 = vor.u32 4788187, %v354_v13  ;;  %v369_v63 = vadd.s32 3, %v365_v23  ;;  %v358_v15 = vcvt.s32.f32 %v351_v58  ;;  %vm973_vm12 = vcmp.lt.s32.totalorder %v972_v52, 0 }
  0xbe   :  { %v439_v25 = vsel %vm437_vm11, %v438_v24, %v1293_v5  ;;  %v184_v30 = vsel %vm183_vm10, %v182_v11, 0  ;;  %v139_v29 = vsel %vm973_vm12, 0, %v972_v52  ;;  %v1317_v36 = vsel %vm1284_vm9, 0, %v155_v22 }
  0xbf   :  { %v356_v37 = vand.u32 2147483647, %v355_v26  ;;  %v440_v31 = vadd.s32 %v439_v25, %v435_v18  ;;  %v1313_v21 = vshrl.u32 %v184_v30, 5  ;;  %v140_v12 = vsub.s32 32, %v139_v29 }
  0xc0   :  { %v144_v32 = vsub.s32 4294967266, %v139_v29  ;;  %v186_v48 = vand.u32 31, %v184_v30  ;;  %v1319_v59 = vshll.u32 %v180_v17, 8  ;;  %v1321_v45 = vand.u32 3, %v365_v23 }
  0xc1   :  { %v359_v34 = vmul.f32 %v358_v15, %v356_v37  ;;  %v441_v44 = vadd.s32 536870912, %v440_v31  ;;  %v141_v49 = vshll.u32 %v1272_v35, %v139_v29  ;;  %v142_v55 = vshrl.u32 %v124_v14, %v140_v12 }
  0xc2   :  { %v145_v47 = vadd.s32 127, %v144_v32  ;;  %v187_v61 = vsub.s32 32, %v186_v48  ;;  %vm204_vm13 = vcmp.lt.s32.totalorder %v1313_v21, 1  ;;  %v1327_v43 = vand.u32 3, %v369_v63 }
  0xc3   :  { %v360_v1 = vxor.u32 2147483648, %v359_v34  ;;  %v1324_v3 = vshrl.u32 %v441_v44, 30  ;;  %v143_v41 = vor.u32 %v142_v55, %v141_v49  ;;  %v189_v42 = vshll.u32 %v1083_v56, %v186_v48 }
  0xc4   :  { %v146_v53 = vshll.u32 %v145_v47, 23  ;;  %v190_v5 = vshrl.u32 %v1084_v60, %v187_v61  ;;  %v192_v57 = vshll.u32 %v1084_v60, %v186_v48  ;;  %v193_v7 = vshrl.u32 %v1085_v62, %v187_v61 }
  0xc5   :  { %v361_v6 = vsel %vm278_vm0, %v360_v1, %v359_v34  ;;  %v443_v35 = vshll.u32 %v1324_v3, 30  ;;  %v188_v10 = vshrl.u32 %v1083_v56, %v187_v61  ;;  %v195_v11 = vshll.u32 %v1085_v62, %v186_v48 }
  0xc6   :  { %v364_v23 = vsel %vm1261_vm2, %v1127_v19, %v361_v6  ;;  %v147_v51 = vor.u32 4788187, %v146_v53  ;;  %v150_v58 = vcvt.s32.f32 %v143_v41  ;;  %v191_v14 = vor.u32 %v190_v5, %v189_v42 }
  0xc7   :  { %1041 = vcosq.f32 %v364_v23  ;;  %v1341_v13 = vsub.s32 %v440_v31, %v443_v35  ;;  %v194_v52 = vor.u32 %v193_v7, %v192_v57  ;;  %v196_v60 = vshrl.u32 %v1086_v0, %v187_v61 }
  0xc8   :  { %1043 = vsinq.f32 %v364_v23  ;;  %v148_v17 = vand.u32 2147483647, %v147_v51  ;;  %v198_v16 = vshll.u32 %v1086_v0, %v186_v48  ;;  %v199_v24 = vshrl.u32 %v1087_v2, %v187_v61 }
  0xc9   :  { %v446_v22 = vsub.s32 0, %v1341_v13  ;;  %v201_v56 = vshll.u32 %v1087_v2, %v186_v48  ;;  %v197_v62 = vor.u32 %v196_v60, %v195_v11  ;;  %v202_v18 = vshrl.u32 %v1088_v9, %v187_v61 }
  0xca   :  { %v151_v26 = vmul.f32 %v150_v58, %v148_v17  ;;  %vm206_vm14 = vcmp.lt.s32.totalorder %v1313_v21, 3  ;;  %v200_v15 = vor.u32 %v199_v24, %v198_v16  ;;  %vm207_vm15 = vcmp.lt.s32.totalorder %v1313_v21, 4 }
  0xcb   :  { %v983_v63 = vmin.u32 %v446_v22, %v1341_v13  ;;  %v208_v25 = vsel %vm204_vm13, %v188_v10, %v191_v14  ;;  %v203_v0 = vor.u32 %v202_v18, %v201_v56  ;;  %v209_v37 = vsel %vm207_vm15, %v197_v62, 2102212464 }
  0xcc   :  { %v152_v30 = vxor.u32 2147483648, %v151_v26  ;;  %v212_v2 = vsel %vm204_vm13, %v191_v14, %v194_v52  ;;  %v210_v9 = vsel %vm206_vm14, %v194_v52, %v209_v37  ;;  %v213_v31 = vsel %vm207_vm15, %v200_v15, 920167782 }
  0xcd   :  { %v448_v29 = vclz %v983_v63  ;;  %v216_v12 = vsel %vm204_vm13, %v194_v52, %v197_v62  ;;  %vm205_vm0 = vcmp.lt.s32.totalorder %v1313_v21, 2  ;;  %v214_v48 = vsel %vm206_vm14, %v197_v62, %v213_v31 }
  0xce   :  { %v153_v32 = vsel %vm70_vm6, %v152_v30, %v151_v26  ;;  %v217_v34 = vsel %vm207_vm15, %v203_v0, 1326507024  ;;  %v215_v55 = vsel %vm205_vm0, %v212_v2, %v214_v48  ;;  %v211_v61 = vsel %vm205_vm0, %v208_v25, %v210_v9  ;;  %v1412_v2 = vpop.permute.xlu1 %1037 }
  0xcf   :  { %v156_v44 = vsel %vm1284_vm9, %v1129_v20, %v153_v32  ;;  %v984_v49 = vadd.s32 4294967294, %v448_v29  ;;  %v218_v47 = vsel %vm206_vm14, %v200_v15, %v217_v34  ;;  %v436_v21 = vadd.s32 %v1292_v4, %v1298_v8 }
  0xd0   :  { %v219_v1 = vsel %vm205_vm0, %v216_v12, %v218_v47  ;;  %v1371_v41 = vmul.u32.u64.low %v1319_v59, %v215_v55  ;;  %v1372_v53 = vmul.u32.u64.high %v1319_v59, %v215_v55, %v1371_v41  ;;  %1045 = vsinq.f32 %v156_v44 }
  0xd1   :  { %v1042_v42 = vpop.eup %1041  ;;  %vm985_vm1 = vcmp.lt.s32.totalorder %v984_v49, 0  ;;  %v1376_v5 = vmul.u32.u64.low %v1319_v59, %v219_v1  ;;  %v1377_v6 = vmul.u32.u64.high %v1319_v59, %v219_v1, %v1376_v5  ;;  %1047 = vcosq.f32 %v156_v44 }
  0xd2   :  { %v1044_v54 = vpop.eup %1043  ;;  %v451_v35 = vsel %vm985_vm1, 0, %v984_v49  ;;  %v161_v57 = vadd.s32 3, %v1317_v36  ;;  %v227_v51 = vmul.u32 %v1319_v59, %v211_v61  ;;  %v230_v11 = vadd.s32 1, %v1372_v53 }
  0xd3   :  { %v452_v7 = vsub.s32 32, %v451_v35  ;;  %v456_v23 = vsub.s32 4294967266, %v451_v35  ;;  %v373_v10 = vxor.u32 2147483648, %v1044_v54  ;;  %vm372_vm2 = vcmp.eq.s32.totalorder %v1327_v43, 0 }
  0xd4   :  { %vm375_vm3 = vcmp.eq.s32.totalorder %v1327_v43, 2  ;;  %v376_v58 = vxor.u32 2147483648, %v1042_v42  ;;  %v453_v14 = vshll.u32 %v1341_v13, %v451_v35  ;;  %vm229_vm4 = vc.u32 %v1377_v6, %v1371_v41 }
  0xd5   :  { %v454_v17 = vshrl.u32 %v436_v21, %v452_v7  ;;  %v457_v52 = vadd.s32 127, %v456_v23  ;;  %v231_v4 = vsel %vm229_vm4, %v230_v11, %v1372_v53  ;;  %vm371_vm5 = vcmp.lt.s32.totalorder %v1327_v43, 2 }
  0xd6   :  { %v374_v8 = vsel %vm372_vm2, %v1042_v42, %v373_v10  ;;  %v377_v59 = vsel %vm375_vm3, %v376_v58, %v1044_v54  ;;  %v232_v16 = vadd.s32 %v231_v4, %v227_v51  ;;  %vm368_vm6 = vweird.f32 %v1127_v19 }
  0xd7   :  { %v455_v60 = vor.u32 %v454_v17, %v453_v14  ;;  %v458_v22 = vshll.u32 %v457_v52, 23  ;;  %v378_v24 = vsel %vm371_vm5, %v374_v8, %v377_v59  ;;  %v1396_v13 = vrot.slane %v67_v38, %v487_v40  ;;  %v1436_v14 = vpop.permute.xlu0 %1032 }
  0xd8   :  { %v1401_v56 = vrot.slane %v1218_v27, %v487_v40  ;;  %v233_v26 = vadd.s32 536870912, %v232_v16  ;;  %v379_v62 = vsel %vm368_vm6, nan, %v378_v24  ;;  %vm794_vm7 = vcmp.lt.s32.totalorder %v1321_v45, 2 }
  0xd9   :  { %v459_v43 = vor.u32 4788187, %v458_v22  ;;  %v462_v18 = vcvt.s32.f32 %v455_v60  ;;  %vm795_vm8 = vcmp.eq.s32.totalorder %v1321_v45, 0  ;;  %vm798_vm9 = vcmp.eq.s32.totalorder %v1321_v45, 2 }
  0xda   :  { %v162_v63 = vand.u32 3, %v161_v57  ;;  %v1046_v38 = vpop.eup %1045  ;;  %v1408_v25 = vshrl.u32 %v233_v26, 30  ;;  %v797_v46 = vsel %vm795_vm8, %v1042_v42, %v373_v10  ;;  %v800_v27 = vsel %vm798_vm9, %v376_v58, %v1044_v54 }
  0xdb   :  { %v460_v15 = vand.u32 2147483647, %v459_v43  ;;  %v1048_v40 = vpop.eup %1047  ;;  %v466_v30 = vsub.s32 4, %v1324_v3  ;;  %v492_v0 = vmul.f32 %v1396_v13, %v379_v62  ;;  %v801_v37 = vsel %vm794_vm7, %v797_v46, %v800_v27 }
  0xdc   :  { %v235_v9 = vshll.u32 %v1408_v25, 30  ;;  %v802_v45 = vsel %vm368_vm6, nan, %v801_v37  ;;  %vm944_vm10 = vcmask 261120   ;;  %vm1419_vm11 = vcmp.le.f32.partialorder %v380_v33, 0.7853982 }
  0xdd   :  { %v463_v29 = vmul.f32 %v462_v18, %v460_v15  ;;  %vm382_vm12 = vcmp.lt.s32.totalorder %v1137_v28, 0  ;;  %v914_v12 = vmul.f32 %v1401_v56, %v802_v45  ;;  %v165_v32 = vxor.u32 2147483648, %v1046_v38 }
  0xde   :  { %v236_v34 = vsub.s32 %v232_v16, %v235_v9  ;;  %v1039_v44 = vunpack.i.l.bf16 %v1412_v2  ;;  %vm164_vm13 = vcmp.eq.s32.totalorder %v162_v63, 0  ;;  %v467_v19 = vsel %vm382_vm12, %v466_v30, %v1324_v3 }
  0xdf   :  { %v464_v48 = vxor.u32 2147483648, %v463_v29  ;;  %v918_v49 = vadd.f32 %v914_v12, %v492_v0  ;;  %v166_v55 = vsel %vm164_vm13, %v1048_v40, %v165_v32  ;;  %v168_v47 = vxor.u32 2147483648, %v1048_v40 }
  0xe0   :  { %v238_v33 = vsub.s32 0, %v236_v34  ;;  %vm163_vm14 = vcmp.lt.s32.totalorder %v162_v63, 2  ;;  %vm167_vm15 = vcmp.eq.s32.totalorder %v162_v63, 2  ;;  %v587_v5 = vand.u32 3, %v1317_v36 }
  0xe1   :  { %v465_v61 = vsel %vm382_vm12, %v464_v48, %v463_v29  ;;  %v942_v53 = vmul.f32 %v1039_v44, %v918_v49  ;;  %v169_v42 = vsel %vm167_vm15, %v168_v47, %v1046_v38  ;;  %v469_v54 = vsel %vm1419_vm11, 0, %v467_v19 }
  0xe2   :  { %v468_v1 = vsel %vm1419_vm11, %v1137_v28, %v465_v61  ;;  %v975_v3 = vmin.u32 %v238_v33, %v236_v34  ;;  %v170_v21 = vsel %vm163_vm14, %v166_v55, %v169_v42  ;;  %vm160_vm0 = vweird.f32 %v1129_v20 }
  0xe3   :  { %1049 = vcosq.f32 %v468_v1  ;;  %947 = vst.msk [vmem:[#allocation2 + $0x10] sm:$0xff] %vm944_vm10, %v942_v53  ;;  %v171_v57 = vsel %vm160_vm0, nan, %v170_v21  ;;  %vm589_vm1 = vcmp.eq.s32.totalorder %v587_v5, 0  ;;  %v473_v7 = vadd.s32 3, %v469_v54 }
  0xe4   :  { %1051 = vsinq.f32 %v468_v1  ;;  %v240_v35 = vclz %v975_v3  ;;  %v591_v23 = vsel %vm589_vm1, %v1048_v40, %v165_v32  ;;  %vm592_vm2 = vcmp.eq.s32.totalorder %v587_v5, 2 }
  0xe5   :  { %vm588_vm3 = vcmp.lt.s32.totalorder %v587_v5, 2  ;;  %v594_v36 = vsel %vm592_vm2, %v168_v47, %v1046_v38  ;;  %v490_v10 = vmul.f32 %v1396_v13, %v171_v57  ;;  %v474_v52 = vand.u32 3, %v473_v7 }
  0xe6   :  { %v976_v51 = vadd.s32 4294967294, %v240_v35  ;;  %v595_v11 = vsel %vm588_vm3, %v591_v23, %v594_v36  ;;  %v228_v4 = vadd.s32 %v1371_v41, %v1377_v6  ;;  %v896_v60 = vand.u32 3, %v469_v54 }
  0xe7   :  { %v596_v58 = vsel %vm160_vm0, nan, %v595_v11  ;;  %v1034_v16 = vunpack.i.l.bf16 %v1436_v14  ;;  %vm475_vm5 = vcmp.lt.s32.totalorder %v474_v52, 2  ;;  %vm479_vm6 = vcmp.eq.s32.totalorder %v474_v52, 2 }
  0xe8   :  { %vm977_vm4 = vcmp.lt.s32.totalorder %v976_v51, 0  ;;  %v912_v20 = vmul.f32 %v1401_v56, %v596_v58  ;;  %vm901_vm7 = vcmp.eq.s32.totalorder %v896_v60, 2  ;;  %vm476_vm8 = vcmp.eq.s32.totalorder %v474_v52, 0 }
  0xe9   :  { %v243_v17 = vsel %vm977_vm4, 0, %v976_v51  ;;  %vm898_vm9 = vcmp.eq.s32.totalorder %v896_v60, 0  ;;  %vm897_vm11 = vcmp.lt.s32.totalorder %v896_v60, 2  ;;  %vm472_vm12 = vweird.f32 %v1137_v28 }
  0xea   :  { %v244_v8 = vsub.s32 32, %v243_v17  ;;  %v248_v59 = vsub.s32 4294967266, %v243_v17  ;;  %v916_v22 = vadd.f32 %v912_v20, %v490_v10  ;;  %v245_v43 = vshll.u32 %v236_v34, %v243_v17 }
  0xeb   :  { %v258_v44 = vsub.s32 4, %v1408_v25  ;;  %v1040_v49 = vunpack.i.h.bf16 %v1412_v2  ;;  %vm174_vm13 = vcmp.lt.s32.totalorder %v1143_v39, 0  ;;  %vm173_vm14 = vcmp.le.f32.partialorder %v172_v50, 0.7853982 }
  0xec   :  { %v246_v26 = vshrl.u32 %v228_v4, %v244_v8  ;;  %v249_v62 = vadd.s32 127, %v248_v59  ;;  %v940_v38 = vmul.f32 %v1034_v16, %v916_v22  ;;  %v1035_v17 = vunpack.i.h.bf16 %v1436_v14 }
  0xed   :  { %v1050_v24 = vpop.eup %1049  ;;  %v259_v61 = vsel %vm174_vm13, %v258_v44, %v1408_v25 }
  0xee   :  { %v1052_v18 = vpop.eup %1051  ;;  %v480_v63 = vxor.u32 2147483648, %v1050_v24  ;;  %v247_v15 = vor.u32 %v246_v26, %v245_v43  ;;  %v250_v46 = vshll.u32 %v249_v62, 23  ;;  %945 = vst.msk [vmem:[#allocation2] sm:$0xff] %vm944_vm10, %v940_v38  ;;  %v261_v1 = vsel %vm173_vm14, 0, %v259_v61 }
  0xef   :  { %v477_v27 = vxor.u32 2147483648, %v1052_v18  ;;  %v265_v53 = vadd.s32 3, %v261_v1  ;;  %v690_v2 = vand.u32 3, %v261_v1 }
  0xf0   :  { %v481_v41 = vsel %vm479_vm6, %v480_v63, %v1052_v18  ;;  %v903_v6 = vsel %vm901_vm7, %v480_v63, %v1052_v18  ;;  %v251_v40 = vor.u32 4788187, %v250_v46  ;;  %v254_v45 = vcvt.s32.f32 %v247_v15 }
  0xf1   :  { %v478_v30 = vsel %vm476_vm8, %v1050_v24, %v477_v27  ;;  %v900_v0 = vsel %vm898_vm9, %v1050_v24, %v477_v27  ;;  %v266_v42 = vand.u32 3, %v265_v53  ;;  %vm695_vm0 = vcmp.eq.s32.totalorder %v690_v2, 2 }
  0xf2   :  { %v482_v37 = vsel %vm475_vm5, %v478_v30, %v481_v41  ;;  %v904_v29 = vsel %vm897_vm11, %v900_v0, %v903_v6  ;;  %v252_v9 = vand.u32 2147483647, %v251_v40  ;;  %vm692_vm2 = vcmp.eq.s32.totalorder %v690_v2, 0 }
  0xf3   :  { %v483_v31 = vsel %vm472_vm12, nan, %v482_v37  ;;  %v905_v12 = vsel %vm472_vm12, nan, %v904_v29  ;;  %vm271_vm15 = vcmp.eq.s32.totalorder %v266_v42, 2  ;;  %vm268_vm1 = vcmp.eq.s32.totalorder %v266_v42, 0 }
  0xf4   :  { %v493_v32 = vmul.f32 %v1396_v13, %v483_v31  ;;  %v915_v48 = vmul.f32 %v1401_v56, %v905_v12  ;;  %v255_v34 = vmul.f32 %v254_v45, %v252_v9  ;;  %vm267_vm3 = vcmp.lt.s32.totalorder %v266_v42, 2 }
  0xf5   :  { %vm691_vm4 = vcmp.lt.s32.totalorder %v690_v2, 2  ;;  %vm264_vm5 = vweird.f32 %v1143_v39 }
  0xf6   :  { %v919_v19 = vadd.f32 %v915_v48, %v493_v32  ;;  %v256_v55 = vxor.u32 2147483648, %v255_v34 }
  0xf8   :  { %v943_v28 = vmul.f32 %v1040_v49, %v919_v19  ;;  %v257_v47 = vsel %vm174_vm13, %v256_v55, %v255_v34 }
  0xf9   :  { %v260_v33 = vsel %vm173_vm14, %v1143_v39, %v257_v47 }
  0xfa   :  { %948 = vst.msk [vmem:[#allocation2 + $0x18] sm:$0xff] %vm944_vm10, %v943_v28  ;;  %1053 = vcosq.f32 %v260_v33 }
  0xfb   :  { %1055 = vsinq.f32 %v260_v33 }
 0x104   :  { %v1054_v5 = vpop.eup %1053 }
 0x105   :  { %v1056_v54 = vpop.eup %1055  ;;  %v272_v3 = vxor.u32 2147483648, %v1054_v5 }
 0x106   :  { %v269_v21 = vxor.u32 2147483648, %v1056_v54 }
 0x107   :  { %v273_v50 = vsel %vm271_vm15, %v272_v3, %v1056_v54  ;;  %v697_v25 = vsel %vm695_vm0, %v272_v3, %v1056_v54 }
 0x108   :  { %v270_v35 = vsel %vm268_vm1, %v1054_v5, %v269_v21  ;;  %v694_v57 = vsel %vm692_vm2, %v1054_v5, %v269_v21 }
 0x109   :  { %v274_v7 = vsel %vm267_vm3, %v270_v35, %v273_v50  ;;  %v698_v23 = vsel %vm691_vm4, %v694_v57, %v697_v25 }
 0x10a   :  { %v275_v51 = vsel %vm264_vm5, nan, %v274_v7  ;;  %v699_v36 = vsel %vm264_vm5, nan, %v698_v23 }
 0x10b   :  { %v491_v10 = vmul.f32 %v1396_v13, %v275_v51  ;;  %v913_v11 = vmul.f32 %v1401_v56, %v699_v36 }
 0x10d   :  { %v917_v58 = vadd.f32 %v913_v11, %v491_v10 }
 0x10f   :  { %v941_v52 = vmul.f32 %v1035_v17, %v917_v58 }
 0x111   :  { %946 = vst.msk [vmem:[#allocation2 + $0x8] sm:$0xff] %vm944_vm10, %v941_v52 }
 0x112   :  { %1068 = shalt.err (!%p1065_p4)
}
 0x113   :  { %s1069_s26 = scalar_lea.hbm %s1475_s3, 512 }
 0x114   :  { %p1070_p5 = scmp.ne.s32.totalorder %s1475_s3, %s1069_s26  ;;  %p1073_p6 = scmp.lt.u32.totalorder %s1069_s26, %s1475_s3 }
 0x116   :  { %p1075_p7 = pnand %p1073_p6, %p1070_p5 }
 0x118   :  { %1078 = shalt.err (!%p1075_p7)
}
 0x119   :  { %s1090_s4 = smov 128   ;;  %s1091_s5 = smov 8  }
 0x11a   :  { %960 = dma.vmem_to_hbm [thread:$0]  %s955_s22, 512, %s1475_s3, [#allocation3], %s1090_s4, %s1090_s4, %s1091_s5  }
 0x11b   :  { %1079 = dma.done.wait [#allocation3], 512  }
 0x11c   :  { %1080 = vsyncadd [#allocation3], 4294966784 }
 0x11d   :  { %964 = vsyncpa [#allocation3], 1 }

</bundles_post_ra>
